<compile_context>
chip_gen: v6e
topology: v6e:2x2x1
jax: 0.10.0
libtpu: 0.0.40
codegen_flags: <defaults>
</compile_context>

<pallas_src>
import jax
import jax.numpy as jnp
from jax.experimental import pallas as pl
from jax.experimental.pallas import tpu as pltpu

EPS = 1e-5  # InstanceNorm2d default eps (affine=False, biased variance)


def _round_up(v, m):
    return (v + m - 1) // m * m


# ----------------------------------------------------------------------------
# Fused Pallas kernel:
#   [conv_1 3x3  +  1x1 shortcut]  (one stacked matmul) -> IN -> (ReLU | id)
#   conv_2 3x3 -> IN -> ReLU -> add shortcut
# Layout: channels on sublanes, flattened padded spatial (row stride W+2) on
# lanes.  x_ref is the pre-padded flat image of one batch element.
# ----------------------------------------------------------------------------
def _upconv_fused_kernel(x_ref, wc_ref, bc_ref, w2_ref, b2_ref,
                         o_ref, ypad_ref, col_ref):
    cin, PADF = x_ref.shape              # PADF = (H + 3) * (W + 2)
    cout, HWP = o_ref.shape              # HWP  = H * (W + 2)
    c_pad = col_ref.shape[0] // 9        # padded channel stride in im2col
    Wp = (PADF - HWP) // 3               # W + 2
    W = Wp - 2
    H = HWP // Wp
    inv_n = 1.0 / float(H * W)

    # valid output columns of the Wp-strided flat layout
    lane = jax.lax.broadcasted_iota(jnp.int32, (1, HWP), 1)
    valid = (lane % Wp) < W              # (1, HWP) bool

    # Scratch is re-written every step (no cross-step carry -> megacore safe).
    col_ref[...] = jnp.zeros(col_ref.shape, col_ref.dtype)
    ypad_ref[...] = jnp.zeros(ypad_ref.shape, ypad_ref.dtype)

    def build_im2col(src_ref, rows):
        # each 3x3 tap is a lane-offset slice of the flat padded image
        for t in range(9):
            off = (t // 3) * Wp + (t % 3)
            col_ref[t * c_pad:t * c_pad + rows, :] = src_ref[:, pl.ds(off, HWP)]

    def inst_norm(a):
        # single-pass IN: per-channel sum / sum-of-squares over valid columns
        am = jnp.where(valid, a, 0.0)
        s1 = jnp.sum(am, axis=1, keepdims=True)
        s2 = jnp.sum(am * am, axis=1, keepdims=True)
        mean = s1 * inv_n
        var = jnp.maximum(s2 * inv_n - mean * mean, 0.0)
        return (a - mean) * jax.lax.rsqrt(var + EPS)

    # ---- conv_1 (3x3) and 1x1 shortcut: ONE stacked matmul + one IN pass ---
    build_im2col(x_ref, cin)
    a = jnp.dot(wc_ref[...], col_ref[...],
                preferred_element_type=jnp.float32) + bc_ref[...]
    an = inst_norm(a)                                     # (2*cout, HWP)
    y1 = jnp.where(valid, jnp.maximum(an[:cout, :], 0.0), 0.0)
    sc = an[cout:, :]                                     # shortcut (no ReLU)

    # place y1 into its zero-padded flat buffer: uniform lane shift by Wp + 1
    ypad_ref[:, pl.ds(Wp + 1, HWP)] = y1.astype(ypad_ref.dtype)

    # ---- conv_2: 3x3 -> IN -> ReLU, then residual add ----------------------
    build_im2col(ypad_ref, cout)
    a2 = jnp.dot(w2_ref[...], col_ref[...],
                 preferred_element_type=jnp.float32) + b2_ref[...]
    y2 = jnp.maximum(inst_norm(a2), 0.0)

    o_ref[...] = jnp.where(valid, y2 + sc, 0.0)


# ----------------------------------------------------------------------------
# Glue (plain JAX): bilinear upsample, padding, concat, halo pad / flatten
# ----------------------------------------------------------------------------
def _upsample_bilinear_x2_align_corners(x):
    # x: (N, C, H, W) -> (N, C, 2H, 2W), matches nn.Upsample(align_corners=True)
    N, C, H, W = x.shape
    Ho, Wo = 2 * H, 2 * W
    src_y = jnp.arange(Ho, dtype=jnp.float32) * (H - 1) / (Ho - 1)
    src_x = jnp.arange(Wo, dtype=jnp.float32) * (W - 1) / (Wo - 1)
    y0 = jnp.floor(src_y).astype(jnp.int32)
    x0 = jnp.floor(src_x).astype(jnp.int32)
    y1 = jnp.minimum(y0 + 1, H - 1)
    x1 = jnp.minimum(x0 + 1, W - 1)
    wy = (src_y - y0.astype(jnp.float32))[None, None, :, None]
    wx = (src_x - x0.astype(jnp.float32))[None, None, None, :]
    rows = x[:, :, y0, :] * (1.0 - wy) + x[:, :, y1, :] * wy
    out = rows[:, :, :, x0] * (1.0 - wx) + rows[:, :, :, x1] * wx
    return out


def _prep_input(x1, x2):
    x1u = _upsample_bilinear_x2_align_corners(x1)
    diffY = x2.shape[2] - x1u.shape[2]
    diffX = x2.shape[3] - x1u.shape[3]
    x1u = jnp.pad(x1u, ((0, 0), (0, 0),
                        (diffY // 2, diffY - diffY // 2),
                        (diffX // 2, diffX - diffX // 2)))
    return jnp.concatenate([x2, x1u], axis=1)               # (N, Cin_tot, H, W)


def _flatten_conv3x3_weight(w_hwio, c_pad):
    # (3, 3, Cin, Cout) -> (Cout, 9 * c_pad) f32 with tap-major, channel-minor
    # ordering (zero-padded channels), matching the in-kernel im2col rows.
    kh, kw, cin, cout = w_hwio.shape
    w = jnp.transpose(w_hwio, (3, 0, 1, 2))                  # (Cout, 3, 3, Cin)
    w = jnp.pad(w, ((0, 0), (0, 0), (0, 0), (0, c_pad - cin)))
    return w.reshape(cout, kh * kw * c_pad).astype(jnp.float32)


def upconv_forward(x1, x2, indices, params):
    del indices  # unused in the PyTorch forward as well
    x = _prep_input(x1, x2)                                  # (N, Cin, H, W) f32
    N, Cin, H, W = x.shape
    Cout = params["w1"].shape[-1]

    Wp = W + 2
    HWP = H * Wp
    PADF = (H + 3) * Wp            # halo rows + tap-slice tail slack
    c_pad = _round_up(max(Cin, Cout), 8)

    # halo-padded, row-flattened bf16 input (image row r starts at (r+1)*Wp+1)
    xpad = jnp.pad(x.astype(jnp.bfloat16), ((0, 0), (0, 0), (1, 2), (1, 1)))
    x_flat = xpad.reshape(N, Cin, PADF)

    # stacked weight: rows [0, Cout) = conv_1 3x3, rows [Cout, 2*Cout) = 1x1
    # shortcut embedded at the centre tap (t = 4) of the im2col layout.
    w1f = _flatten_conv3x3_weight(params["w1"], c_pad)       # (Cout, 9*c_pad)
    ws_flat = jnp.zeros((Cout, 9 * c_pad), jnp.float32)
    ws_flat = ws_flat.at[:, 4 * c_pad:4 * c_pad + Cin].set(
        params["ws"].T.astype(jnp.float32))
    wc = jnp.concatenate([w1f, ws_flat], axis=0).astype(jnp.bfloat16)
    bc = jnp.concatenate([params["b1"].reshape(Cout, 1),
                          params["bs"].reshape(Cout, 1)],
                         axis=0).astype(jnp.float32)          # (2*Cout, 1)

    w2f = _flatten_conv3x3_weight(params["w2"], c_pad).astype(jnp.bfloat16)
    b2 = params["b2"].reshape(Cout, 1).astype(jnp.float32)

    out_flat = pl.pallas_call(
        _upconv_fused_kernel,
        out_shape=jax.ShapeDtypeStruct((N, Cout, HWP), jnp.float32),
        grid=(N,),
        in_specs=[
            pl.BlockSpec((None, Cin, PADF), lambda n: (n, 0, 0)),
            pl.BlockSpec((2 * Cout, 9 * c_pad), lambda n: (0, 0)),
            pl.BlockSpec((2 * Cout, 1), lambda n: (0, 0)),
            pl.BlockSpec((Cout, 9 * c_pad), lambda n: (0, 0)),
            pl.BlockSpec((Cout, 1), lambda n: (0, 0)),
        ],
        out_specs=pl.BlockSpec((None, Cout, HWP), lambda n: (n, 0, 0)),
        scratch_shapes=[
            pltpu.VMEM((Cout, PADF), jnp.bfloat16),      # zero-padded y1 (flat)
            pltpu.VMEM((9 * c_pad, HWP), jnp.bfloat16),  # shared im2col buffer
        ],
        compiler_params=pltpu.CompilerParams(
            dimension_semantics=("parallel",)),
    )(x_flat, wc, bc, w2f, b2)

    # drop the 2 pad columns of every row of the Wp-strided flat layout
    return out_flat.reshape(N, Cout, H, Wp)[:, :, :, :W]     # NCHW


# ----------------------------------------------------------------------------
# Pure-JAX f32 reference (sanity check against the Pallas kernel)
# ----------------------------------------------------------------------------
def ref_forward(x1, x2, params):
    x = _prep_input(x1, x2)
    xh = jnp.transpose(x, (0, 2, 3, 1)).astype(jnp.float32)  # NHWC

    def conv(x, w, b, pad):
        y = jax.lax.conv_general_dilated(
            x, w, (1, 1), [(pad, pad), (pad, pad)],
            dimension_numbers=("NHWC", "HWIO", "NHWC"),
            precision=jax.lax.Precision.HIGHEST)
        return y + b

    def inorm(x):
        m = jnp.mean(x, axis=(1, 2), keepdims=True)
        v = jnp.mean((x - m) ** 2, axis=(1, 2), keepdims=True)
        return (x - m) * jax.lax.rsqrt(v + EPS)

    c1 = jax.nn.relu(inorm(conv(xh, params["w1"], params["b1"], 1)))
    c2 = jax.nn.relu(inorm(conv(c1, params["w2"], params["b2"], 1)))
    sc = inorm(conv(xh, params["ws"].reshape(1, 1, *params["ws"].shape),
                    params["bs"], 0))
    return jnp.transpose(c2 + sc, (0, 3, 1, 2))


# ----------------------------------------------------------------------------
# Deterministic parameter init (PyTorch-style uniform(-1/sqrt(fan_in), ...))
# ----------------------------------------------------------------------------
def init_params(key, c_in, c_out):
    ks = jax.random.split(key, 6)

    def u(k, shape, fan_in):
        bound = 1.0 / float(fan_in) ** 0.5
        return jax.random.uniform(k, shape, jnp.float32, -bound, bound)

    return {
        "w1": u(ks[0], (3, 3, c_in, c_out), 9 * c_in),    # conv_1 weight (HWIO)
        "b1": u(ks[1], (1, c_out), 9 * c_in),
        "w2": u(ks[2], (3, 3, c_out, c_out), 9 * c_out),  # conv_2 weight
        "b2": u(ks[3], (1, c_out), 9 * c_out),
        "ws": u(ks[4], (c_in, c_out), c_in),              # 1x1 shortcut weight
        "bs": u(ks[5], (1, c_out), c_in),
    }


if __name__ == "__main__":
    key = jax.random.PRNGKey(0)
    kx1, kx2, kp = jax.random.split(key, 3)

    in_ch_x1, in_ch_x2, out_ch = 4, 2, 8
    N, H, W = 2, 16, 16

    x1 = jax.random.normal(kx1, (N, in_ch_x1, H // 2, W // 2), jnp.float32)
    x2 = jax.random.normal(kx2, (N, in_ch_x2, H, W), jnp.float32)
    indices = jnp.zeros((N, in_ch_x1, H // 2, W // 2), jnp.int32)  # unused
    params = init_params(kp, in_ch_x1 + in_ch_x2, out_ch)

    out = jax.block_until_ready(upconv_forward(x1, x2, indices, params))
    assert out.shape == (N, out_ch, H, W), out.shape

    ref = ref_forward(x1, x2, params)
    err = out - ref
    max_err = float(jnp.max(jnp.abs(err)))
    rel_l2 = float(jnp.linalg.norm(err) / (jnp.linalg.norm(ref) + 1e-12))
    # bf16 MXU operands vs an f32 HIGHEST reference: loose elementwise bound
    # plus a tight relative-L2 bound.
    assert max_err < 2e-1, f"max abs err vs reference: {max_err}"
    assert rel_l2 < 5e-2, f"relative L2 err vs reference: {rel_l2}"

    print("KERNEL_OK")
</pallas_src>

<mosaic_0001>
module attributes {stable_mosaic.version = 11 : i64} {
  func.func @_upconv_fused_kernel(%arg0: i32, %arg1: memref<1x6x342xbf16, #tpu.memory_space<vmem>>, %arg2: memref<16x72xbf16, #tpu.memory_space<vmem>>, %arg3: memref<16x1xf32, #tpu.memory_space<vmem>>, %arg4: memref<8x72xbf16, #tpu.memory_space<vmem>>, %arg5: memref<8x1xf32, #tpu.memory_space<vmem>>, %arg6: memref<1x8x288xf32, #tpu.memory_space<vmem>>, %arg7: memref<8x342xbf16, #tpu.memory_space<vmem>>, %arg8: memref<72x288xbf16, #tpu.memory_space<vmem>>) attributes {dimension_semantics = [#tpu.dimension_semantics<parallel>], iteration_bounds = array<i64: 2>, scalar_prefetch = 0 : i64, scratch_operands = 2 : i64, tpu.core_type = #tpu.core_type<tc>, window_params = [{transform_indices = @transform_0, window_bounds = array<i64: 1, 6, 342>}, {pipeline_mode = #tpu.pipeline_mode<synchronous>, transform_indices = @transform_1, window_bounds = array<i64: 16, 72>}, {pipeline_mode = #tpu.pipeline_mode<synchronous>, transform_indices = @transform_2, window_bounds = array<i64: 16, 1>}, {pipeline_mode = #tpu.pipeline_mode<synchronous>, transform_indices = @transform_3, window_bounds = array<i64: 8, 72>}, {pipeline_mode = #tpu.pipeline_mode<synchronous>, transform_indices = @transform_4, window_bounds = array<i64: 8, 1>}, {transform_indices = @transform_5, window_bounds = array<i64: 1, 8, 288>}]} {
    %0 = tpu.iota {dimensions = array<i32: 1>} : vector<1x288xi32>
    %c18_i32 = arith.constant 18 : i32
    %c0_i32 = arith.constant 0 : i32
    %1 = arith.cmpi eq, %c18_i32, %c0_i32 : i32
    %c1_i32 = arith.constant 1 : i32
    %2 = arith.select %1, %c1_i32, %c18_i32 : i32
    %3 = vector.broadcast %2 : i32 to vector<1x288xi32>
    %4 = arith.remsi %0, %3 : vector<1x288xi32>
    %c0_i32_0 = arith.constant 0 : i32
    %5 = vector.broadcast %c0_i32_0 : i32 to vector<1x288xi32>
    %6 = arith.cmpi ne, %4, %5 : vector<1x288xi32>
    %c0_i32_1 = arith.constant 0 : i32
    %7 = vector.broadcast %c0_i32_1 : i32 to vector<1x288xi32>
    %8 = arith.cmpi slt, %4, %7 : vector<1x288xi32>
    %c0_i32_2 = arith.constant 0 : i32
    %9 = arith.cmpi slt, %2, %c0_i32_2 : i32
    %10 = vector.broadcast %9 : i1 to vector<1x288xi1>
    %11 = vector.broadcast %10 : vector<1x288xi1> to vector<1x288xi1>
    %12 = arith.xori %8, %11 : vector<1x288xi1>
    %13 = arith.andi %12, %6 : vector<1x288xi1>
    %14 = vector.broadcast %2 : i32 to vector<1x288xi32>
    %15 = arith.addi %4, %14 : vector<1x288xi32>
    %16 = arith.select %13, %15, %4 : vector<1x288xi1>, vector<1x288xi32>
    %c16_i32 = arith.constant 16 : i32
    %17 = vector.broadcast %c16_i32 : i32 to vector<1x288xi32>
    %18 = arith.cmpi slt, %16, %17 : vector<1x288xi32>
    %cst = arith.constant 0.000000e+00 : bf16
    %19 = vector.broadcast %cst : bf16 to vector<72x288xbf16>
    %c0 = arith.constant 0 : index
    %c0_3 = arith.constant 0 : index
    %20 = vector.load %arg8[%c0, %c0_3] : memref<72x288xbf16, #tpu.memory_space<vmem>>, vector<72x288xbf16>
    tpu.vector_store %arg8[%c0, %c0_3], %19 {strides = array<i32>} : memref<72x288xbf16, #tpu.memory_space<vmem>>, vector<72x288xbf16>,
    %cst_4 = arith.constant 0.000000e+00 : bf16
    %21 = vector.broadcast %cst_4 : bf16 to vector<8x342xbf16>
    %c0_5 = arith.constant 0 : index
    %c0_6 = arith.constant 0 : index
    %22 = vector.load %arg7[%c0_5, %c0_6] : memref<8x342xbf16, #tpu.memory_space<vmem>>, vector<8x342xbf16>
    tpu.vector_store %arg7[%c0_5, %c0_6], %21 {strides = array<i32>} : memref<8x342xbf16, #tpu.memory_space<vmem>>, vector<8x342xbf16>,
    %c0_7 = arith.constant 0 : index
    %c0_8 = arith.constant 0 : index
    %c0_9 = arith.constant 0 : index
    %23 = vector.load %arg1[%c0_7, %c0_8, %c0_9] : memref<1x6x342xbf16, #tpu.memory_space<vmem>>, vector<1x6x288xbf16>
    %24 = vector.shape_cast %23 : vector<1x6x288xbf16> to vector<6x288xbf16>
    %c0_10 = arith.constant 0 : index
    %c0_11 = arith.constant 0 : index
    %25 = vector.load %arg8[%c0_10, %c0_11] : memref<72x288xbf16, #tpu.memory_space<vmem>>, vector<6x288xbf16>
    tpu.vector_store %arg8[%c0_10, %c0_11], %24 {strides = array<i32>} : memref<72x288xbf16, #tpu.memory_space<vmem>>, vector<6x288xbf16>,
    %c0_12 = arith.constant 0 : index
    %c0_13 = arith.constant 0 : index
    %c1 = arith.constant 1 : index
    %26 = vector.load %arg1[%c0_12, %c0_13, %c1] : memref<1x6x342xbf16, #tpu.memory_space<vmem>>, vector<1x6x288xbf16>
    %27 = vector.shape_cast %26 : vector<1x6x288xbf16> to vector<6x288xbf16>
    %c8 = arith.constant 8 : index
    %c0_14 = arith.constant 0 : index
    %28 = vector.load %arg8[%c8, %c0_14] : memref<72x288xbf16, #tpu.memory_space<vmem>>, vector<6x288xbf16>
    tpu.vector_store %arg8[%c8, %c0_14], %27 {strides = array<i32>} : memref<72x288xbf16, #tpu.memory_space<vmem>>, vector<6x288xbf16>,
    %c0_15 = arith.constant 0 : index
    %c0_16 = arith.constant 0 : index
    %c2 = arith.constant 2 : index
    %29 = vector.load %arg1[%c0_15, %c0_16, %c2] : memref<1x6x342xbf16, #tpu.memory_space<vmem>>, vector<1x6x288xbf16>
    %30 = vector.shape_cast %29 : vector<1x6x288xbf16> to vector<6x288xbf16>
    %c16 = arith.constant 16 : index
    %c0_17 = arith.constant 0 : index
    %31 = vector.load %arg8[%c16, %c0_17] : memref<72x288xbf16, #tpu.memory_space<vmem>>, vector<6x288xbf16>
    tpu.vector_store %arg8[%c16, %c0_17], %30 {strides = array<i32>} : memref<72x288xbf16, #tpu.memory_space<vmem>>, vector<6x288xbf16>,
    %c0_18 = arith.constant 0 : index
    %c0_19 = arith.constant 0 : index
    %c18 = arith.constant 18 : index
    %32 = vector.load %arg1[%c0_18, %c0_19, %c18] : memref<1x6x342xbf16, #tpu.memory_space<vmem>>, vector<1x6x288xbf16>
    %33 = vector.shape_cast %32 : vector<1x6x288xbf16> to vector<6x288xbf16>
    %c24 = arith.constant 24 : index
    %c0_20 = arith.constant 0 : index
    %34 = vector.load %arg8[%c24, %c0_20] : memref<72x288xbf16, #tpu.memory_space<vmem>>, vector<6x288xbf16>
    tpu.vector_store %arg8[%c24, %c0_20], %33 {strides = array<i32>} : memref<72x288xbf16, #tpu.memory_space<vmem>>, vector<6x288xbf16>,
    %c0_21 = arith.constant 0 : index
    %c0_22 = arith.constant 0 : index
    %c19 = arith.constant 19 : index
    %35 = vector.load %arg1[%c0_21, %c0_22, %c19] : memref<1x6x342xbf16, #tpu.memory_space<vmem>>, vector<1x6x288xbf16>
    %36 = vector.shape_cast %35 : vector<1x6x288xbf16> to vector<6x288xbf16>
    %c32 = arith.constant 32 : index
    %c0_23 = arith.constant 0 : index
    %37 = vector.load %arg8[%c32, %c0_23] : memref<72x288xbf16, #tpu.memory_space<vmem>>, vector<6x288xbf16>
    tpu.vector_store %arg8[%c32, %c0_23], %36 {strides = array<i32>} : memref<72x288xbf16, #tpu.memory_space<vmem>>, vector<6x288xbf16>,
    %c0_24 = arith.constant 0 : index
    %c0_25 = arith.constant 0 : index
    %c20 = arith.constant 20 : index
    %38 = vector.load %arg1[%c0_24, %c0_25, %c20] : memref<1x6x342xbf16, #tpu.memory_space<vmem>>, vector<1x6x288xbf16>
    %39 = vector.shape_cast %38 : vector<1x6x288xbf16> to vector<6x288xbf16>
    %c40 = arith.constant 40 : index
    %c0_26 = arith.constant 0 : index
    %40 = vector.load %arg8[%c40, %c0_26] : memref<72x288xbf16, #tpu.memory_space<vmem>>, vector<6x288xbf16>
    tpu.vector_store %arg8[%c40, %c0_26], %39 {strides = array<i32>} : memref<72x288xbf16, #tpu.memory_space<vmem>>, vector<6x288xbf16>,
    %c0_27 = arith.constant 0 : index
    %c0_28 = arith.constant 0 : index
    %c36 = arith.constant 36 : index
    %41 = vector.load %arg1[%c0_27, %c0_28, %c36] : memref<1x6x342xbf16, #tpu.memory_space<vmem>>, vector<1x6x288xbf16>
    %42 = vector.shape_cast %41 : vector<1x6x288xbf16> to vector<6x288xbf16>
    %c48 = arith.constant 48 : index
    %c0_29 = arith.constant 0 : index
    %43 = vector.load %arg8[%c48, %c0_29] : memref<72x288xbf16, #tpu.memory_space<vmem>>, vector<6x288xbf16>
    tpu.vector_store %arg8[%c48, %c0_29], %42 {strides = array<i32>} : memref<72x288xbf16, #tpu.memory_space<vmem>>, vector<6x288xbf16>,
    %c0_30 = arith.constant 0 : index
    %c0_31 = arith.constant 0 : index
    %c37 = arith.constant 37 : index
    %44 = vector.load %arg1[%c0_30, %c0_31, %c37] : memref<1x6x342xbf16, #tpu.memory_space<vmem>>, vector<1x6x288xbf16>
    %45 = vector.shape_cast %44 : vector<1x6x288xbf16> to vector<6x288xbf16>
    %c56 = arith.constant 56 : index
    %c0_32 = arith.constant 0 : index
    %46 = vector.load %arg8[%c56, %c0_32] : memref<72x288xbf16, #tpu.memory_space<vmem>>, vector<6x288xbf16>
    tpu.vector_store %arg8[%c56, %c0_32], %45 {strides = array<i32>} : memref<72x288xbf16, #tpu.memory_space<vmem>>, vector<6x288xbf16>,
    %c0_33 = arith.constant 0 : index
    %c0_34 = arith.constant 0 : index
    %c38 = arith.constant 38 : index
    %47 = vector.load %arg1[%c0_33, %c0_34, %c38] : memref<1x6x342xbf16, #tpu.memory_space<vmem>>, vector<1x6x288xbf16>
    %48 = vector.shape_cast %47 : vector<1x6x288xbf16> to vector<6x288xbf16>
    %c64 = arith.constant 64 : index
    %c0_35 = arith.constant 0 : index
    %49 = vector.load %arg8[%c64, %c0_35] : memref<72x288xbf16, #tpu.memory_space<vmem>>, vector<6x288xbf16>
    tpu.vector_store %arg8[%c64, %c0_35], %48 {strides = array<i32>} : memref<72x288xbf16, #tpu.memory_space<vmem>>, vector<6x288xbf16>,
    %c0_36 = arith.constant 0 : index
    %c0_37 = arith.constant 0 : index
    %50 = vector.load %arg2[%c0_36, %c0_37] : memref<16x72xbf16, #tpu.memory_space<vmem>>, vector<16x72xbf16>
    %c0_38 = arith.constant 0 : index
    %c0_39 = arith.constant 0 : index
    %51 = vector.load %arg8[%c0_38, %c0_39] : memref<72x288xbf16, #tpu.memory_space<vmem>>, vector<72x288xbf16>
    %cst_40 = arith.constant dense<0.000000e+00> : vector<16x288xf32>
    %52 = tpu.matmul %50, %51, %cst_40 {dimension_numbers = #tpu.dot_dimension_numbers<[1], [0], [0], [1], [0, 0, 1, 1], [], []>} : vector<16x72xbf16>, vector<72x288xbf16>, vector<16x288xf32> -> vector<16x288xf32>
    %c0_41 = arith.constant 0 : index
    %c0_42 = arith.constant 0 : index
    %53 = vector.load %arg3[%c0_41, %c0_42] : memref<16x1xf32, #tpu.memory_space<vmem>>, vector<16x1xf32>
    %54 = vector.broadcast %53 : vector<16x1xf32> to vector<16x288xf32>
    %55 = arith.addf %52, %54 : vector<16x288xf32>
    %cst_43 = arith.constant 0.000000e+00 : f32
    %56 = vector.shape_cast %18 : vector<1x288xi1> to vector<1x288xi1>
    %57 = vector.broadcast %56 : vector<1x288xi1> to vector<16x288xi1>
    %58 = vector.broadcast %cst_43 : f32 to vector<16x288xf32>
    %59 = arith.select %57, %55, %58 : vector<16x288xi1>, vector<16x288xf32>
    %cst_44 = arith.constant dense<0.000000e+00> : vector<16xf32>
    %60 = vector.multi_reduction <add>, %59, %cst_44 [1] : vector<16x288xf32> to vector<16xf32>
    %61 = vector.shape_cast %60 : vector<16xf32> to vector<16x1xf32>
    %62 = arith.mulf %59, %59 : vector<16x288xf32>
    %cst_45 = arith.constant dense<0.000000e+00> : vector<16xf32>
    %63 = vector.multi_reduction <add>, %62, %cst_45 [1] : vector<16x288xf32> to vector<16xf32>
    %64 = vector.shape_cast %63 : vector<16xf32> to vector<16x1xf32>
    %cst_46 = arith.constant 3.906250e-03 : f32
    %65 = vector.broadcast %cst_46 : f32 to vector<16x1xf32>
    %66 = arith.mulf %61, %65 : vector<16x1xf32>
    %cst_47 = arith.constant 3.906250e-03 : f32
    %67 = vector.broadcast %cst_47 : f32 to vector<16x1xf32>
    %68 = arith.mulf %64, %67 : vector<16x1xf32>
    %69 = arith.mulf %66, %66 : vector<16x1xf32>
    %70 = arith.subf %68, %69 : vector<16x1xf32>
    %cst_48 = arith.constant 0.000000e+00 : f32
    %71 = vector.broadcast %cst_48 : f32 to vector<16x1xf32>
    %72 = arith.maximumf %70, %71 : vector<16x1xf32>
    %73 = vector.broadcast %66 : vector<16x1xf32> to vector<16x288xf32>
    %74 = arith.subf %55, %73 : vector<16x288xf32>
    %cst_49 = arith.constant 9.99999974E-6 : f32
    %75 = vector.broadcast %cst_49 : f32 to vector<16x1xf32>
    %76 = arith.addf %72, %75 : vector<16x1xf32>
    %77 = math.rsqrt %76 : vector<16x1xf32>
    %78 = vector.broadcast %77 : vector<16x1xf32> to vector<16x288xf32>
    %79 = arith.mulf %74, %78 : vector<16x288xf32>
    %80 = vector.extract_strided_slice %79 {offsets = [0, 0], sizes = [8, 288], strides = [1, 1]} : vector<16x288xf32> to vector<8x288xf32>
    %cst_50 = arith.constant 0.000000e+00 : f32
    %81 = vector.broadcast %cst_50 : f32 to vector<8x288xf32>
    %82 = arith.maximumf %80, %81 : vector<8x288xf32>
    %cst_51 = arith.constant 0.000000e+00 : f32
    %83 = vector.shape_cast %18 : vector<1x288xi1> to vector<1x288xi1>
    %84 = vector.broadcast %83 : vector<1x288xi1> to vector<8x288xi1>
    %85 = vector.broadcast %cst_51 : f32 to vector<8x288xf32>
    %86 = arith.select %84, %82, %85 : vector<8x288xi1>, vector<8x288xf32>
    %87 = vector.extract_strided_slice %79 {offsets = [8, 0], sizes = [8, 288], strides = [1, 1]} : vector<16x288xf32> to vector<8x288xf32>
    %88 = arith.truncf %86 : vector<8x288xf32> to vector<8x288xbf16>
    %c0_52 = arith.constant 0 : index
    %c19_53 = arith.constant 19 : index
    %89 = vector.load %arg7[%c0_52, %c19_53] : memref<8x342xbf16, #tpu.memory_space<vmem>>, vector<8x288xbf16>
    tpu.vector_store %arg7[%c0_52, %c19_53], %88 {strides = array<i32>} : memref<8x342xbf16, #tpu.memory_space<vmem>>, vector<8x288xbf16>,
    %c0_54 = arith.constant 0 : index
    %c0_55 = arith.constant 0 : index
    %90 = vector.load %arg7[%c0_54, %c0_55] : memref<8x342xbf16, #tpu.memory_space<vmem>>, vector<8x288xbf16>
    %c0_56 = arith.constant 0 : index
    %c0_57 = arith.constant 0 : index
    %91 = vector.load %arg8[%c0_56, %c0_57] : memref<72x288xbf16, #tpu.memory_space<vmem>>, vector<8x288xbf16>
    tpu.vector_store %arg8[%c0_56, %c0_57], %90 {strides = array<i32>} : memref<72x288xbf16, #tpu.memory_space<vmem>>, vector<8x288xbf16>,
    %c0_58 = arith.constant 0 : index
    %c1_59 = arith.constant 1 : index
    %92 = vector.load %arg7[%c0_58, %c1_59] : memref<8x342xbf16, #tpu.memory_space<vmem>>, vector<8x288xbf16>
    %c8_60 = arith.constant 8 : index
    %c0_61 = arith.constant 0 : index
    %93 = vector.load %arg8[%c8_60, %c0_61] : memref<72x288xbf16, #tpu.memory_space<vmem>>, vector<8x288xbf16>
    tpu.vector_store %arg8[%c8_60, %c0_61], %92 {strides = array<i32>} : memref<72x288xbf16, #tpu.memory_space<vmem>>, vector<8x288xbf16>,
    %c0_62 = arith.constant 0 : index
    %c2_63 = arith.constant 2 : index
    %94 = vector.load %arg7[%c0_62, %c2_63] : memref<8x342xbf16, #tpu.memory_space<vmem>>, vector<8x288xbf16>
    %c16_64 = arith.constant 16 : index
    %c0_65 = arith.constant 0 : index
    %95 = vector.load %arg8[%c16_64, %c0_65] : memref<72x288xbf16, #tpu.memory_space<vmem>>, vector<8x288xbf16>
    tpu.vector_store %arg8[%c16_64, %c0_65], %94 {strides = array<i32>} : memref<72x288xbf16, #tpu.memory_space<vmem>>, vector<8x288xbf16>,
    %c0_66 = arith.constant 0 : index
    %c18_67 = arith.constant 18 : index
    %96 = vector.load %arg7[%c0_66, %c18_67] : memref<8x342xbf16, #tpu.memory_space<vmem>>, vector<8x288xbf16>
    %c24_68 = arith.constant 24 : index
    %c0_69 = arith.constant 0 : index
    %97 = vector.load %arg8[%c24_68, %c0_69] : memref<72x288xbf16, #tpu.memory_space<vmem>>, vector<8x288xbf16>
    tpu.vector_store %arg8[%c24_68, %c0_69], %96 {strides = array<i32>} : memref<72x288xbf16, #tpu.memory_space<vmem>>, vector<8x288xbf16>,
    %c0_70 = arith.constant 0 : index
    %c19_71 = arith.constant 19 : index
    %98 = vector.load %arg7[%c0_70, %c19_71] : memref<8x342xbf16, #tpu.memory_space<vmem>>, vector<8x288xbf16>
    %c32_72 = arith.constant 32 : index
    %c0_73 = arith.constant 0 : index
    %99 = vector.load %arg8[%c32_72, %c0_73] : memref<72x288xbf16, #tpu.memory_space<vmem>>, vector<8x288xbf16>
    tpu.vector_store %arg8[%c32_72, %c0_73], %98 {strides = array<i32>} : memref<72x288xbf16, #tpu.memory_space<vmem>>, vector<8x288xbf16>,
    %c0_74 = arith.constant 0 : index
    %c20_75 = arith.constant 20 : index
    %100 = vector.load %arg7[%c0_74, %c20_75] : memref<8x342xbf16, #tpu.memory_space<vmem>>, vector<8x288xbf16>
    %c40_76 = arith.constant 40 : index
    %c0_77 = arith.constant 0 : index
    %101 = vector.load %arg8[%c40_76, %c0_77] : memref<72x288xbf16, #tpu.memory_space<vmem>>, vector<8x288xbf16>
    tpu.vector_store %arg8[%c40_76, %c0_77], %100 {strides = array<i32>} : memref<72x288xbf16, #tpu.memory_space<vmem>>, vector<8x288xbf16>,
    %c0_78 = arith.constant 0 : index
    %c36_79 = arith.constant 36 : index
    %102 = vector.load %arg7[%c0_78, %c36_79] : memref<8x342xbf16, #tpu.memory_space<vmem>>, vector<8x288xbf16>
    %c48_80 = arith.constant 48 : index
    %c0_81 = arith.constant 0 : index
    %103 = vector.load %arg8[%c48_80, %c0_81] : memref<72x288xbf16, #tpu.memory_space<vmem>>, vector<8x288xbf16>
    tpu.vector_store %arg8[%c48_80, %c0_81], %102 {strides = array<i32>} : memref<72x288xbf16, #tpu.memory_space<vmem>>, vector<8x288xbf16>,
    %c0_82 = arith.constant 0 : index
    %c37_83 = arith.constant 37 : index
    %104 = vector.load %arg7[%c0_82, %c37_83] : memref<8x342xbf16, #tpu.memory_space<vmem>>, vector<8x288xbf16>
    %c56_84 = arith.constant 56 : index
    %c0_85 = arith.constant 0 : index
    %105 = vector.load %arg8[%c56_84, %c0_85] : memref<72x288xbf16, #tpu.memory_space<vmem>>, vector<8x288xbf16>
    tpu.vector_store %arg8[%c56_84, %c0_85], %104 {strides = array<i32>} : memref<72x288xbf16, #tpu.memory_space<vmem>>, vector<8x288xbf16>,
    %c0_86 = arith.constant 0 : index
    %c38_87 = arith.constant 38 : index
    %106 = vector.load %arg7[%c0_86, %c38_87] : memref<8x342xbf16, #tpu.memory_space<vmem>>, vector<8x288xbf16>
    %c64_88 = arith.constant 64 : index
    %c0_89 = arith.constant 0 : index
    %107 = vector.load %arg8[%c64_88, %c0_89] : memref<72x288xbf16, #tpu.memory_space<vmem>>, vector<8x288xbf16>
    tpu.vector_store %arg8[%c64_88, %c0_89], %106 {strides = array<i32>} : memref<72x288xbf16, #tpu.memory_space<vmem>>, vector<8x288xbf16>,
    %c0_90 = arith.constant 0 : index
    %c0_91 = arith.constant 0 : index
    %108 = vector.load %arg4[%c0_90, %c0_91] : memref<8x72xbf16, #tpu.memory_space<vmem>>, vector<8x72xbf16>
    %c0_92 = arith.constant 0 : index
    %c0_93 = arith.constant 0 : index
    %109 = vector.load %arg8[%c0_92, %c0_93] : memref<72x288xbf16, #tpu.memory_space<vmem>>, vector<72x288xbf16>
    %cst_94 = arith.constant dense<0.000000e+00> : vector<8x288xf32>
    %110 = tpu.matmul %108, %109, %cst_94 {dimension_numbers = #tpu.dot_dimension_numbers<[1], [0], [0], [1], [0, 0, 1, 1], [], []>} : vector<8x72xbf16>, vector<72x288xbf16>, vector<8x288xf32> -> vector<8x288xf32>
    %c0_95 = arith.constant 0 : index
    %c0_96 = arith.constant 0 : index
    %111 = vector.load %arg5[%c0_95, %c0_96] : memref<8x1xf32, #tpu.memory_space<vmem>>, vector<8x1xf32>
    %112 = vector.broadcast %111 : vector<8x1xf32> to vector<8x288xf32>
    %113 = arith.addf %110, %112 : vector<8x288xf32>
    %cst_97 = arith.constant 0.000000e+00 : f32
    %114 = vector.shape_cast %18 : vector<1x288xi1> to vector<1x288xi1>
    %115 = vector.broadcast %114 : vector<1x288xi1> to vector<8x288xi1>
    %116 = vector.broadcast %cst_97 : f32 to vector<8x288xf32>
    %117 = arith.select %115, %113, %116 : vector<8x288xi1>, vector<8x288xf32>
    %cst_98 = arith.constant dense<0.000000e+00> : vector<8xf32>
    %118 = vector.multi_reduction <add>, %117, %cst_98 [1] : vector<8x288xf32> to vector<8xf32>
    %119 = vector.shape_cast %118 : vector<8xf32> to vector<8x1xf32>
    %120 = arith.mulf %117, %117 : vector<8x288xf32>
    %cst_99 = arith.constant dense<0.000000e+00> : vector<8xf32>
    %121 = vector.multi_reduction <add>, %120, %cst_99 [1] : vector<8x288xf32> to vector<8xf32>
    %122 = vector.shape_cast %121 : vector<8xf32> to vector<8x1xf32>
    %cst_100 = arith.constant 3.906250e-03 : f32
    %123 = vector.broadcast %cst_100 : f32 to vector<8x1xf32>
    %124 = arith.mulf %119, %123 : vector<8x1xf32>
    %cst_101 = arith.constant 3.906250e-03 : f32
    %125 = vector.broadcast %cst_101 : f32 to vector<8x1xf32>
    %126 = arith.mulf %122, %125 : vector<8x1xf32>
    %127 = arith.mulf %124, %124 : vector<8x1xf32>
    %128 = arith.subf %126, %127 : vector<8x1xf32>
    %cst_102 = arith.constant 0.000000e+00 : f32
    %129 = vector.broadcast %cst_102 : f32 to vector<8x1xf32>
    %130 = arith.maximumf %128, %129 : vector<8x1xf32>
    %131 = vector.broadcast %124 : vector<8x1xf32> to vector<8x288xf32>
    %132 = arith.subf %113, %131 : vector<8x288xf32>
    %cst_103 = arith.constant 9.99999974E-6 : f32
    %133 = vector.broadcast %cst_103 : f32 to vector<8x1xf32>
    %134 = arith.addf %130, %133 : vector<8x1xf32>
    %135 = math.rsqrt %134 : vector<8x1xf32>
    %136 = vector.broadcast %135 : vector<8x1xf32> to vector<8x288xf32>
    %137 = arith.mulf %132, %136 : vector<8x288xf32>
    %cst_104 = arith.constant 0.000000e+00 : f32
    %138 = vector.broadcast %cst_104 : f32 to vector<8x288xf32>
    %139 = arith.maximumf %137, %138 : vector<8x288xf32>
    %140 = arith.addf %139, %87 : vector<8x288xf32>
    %cst_105 = arith.constant 0.000000e+00 : f32
    %141 = vector.shape_cast %18 : vector<1x288xi1> to vector<1x288xi1>
    %142 = vector.broadcast %141 : vector<1x288xi1> to vector<8x288xi1>
    %143 = vector.broadcast %cst_105 : f32 to vector<8x288xf32>
    %144 = arith.select %142, %140, %143 : vector<8x288xi1>, vector<8x288xf32>
    %c0_106 = arith.constant 0 : index
    %c0_107 = arith.constant 0 : index
    %c0_108 = arith.constant 0 : index
    %145 = vector.load %arg6[%c0_106, %c0_107, %c0_108] : memref<1x8x288xf32, #tpu.memory_space<vmem>>, vector<1x8x288xf32>
    %146 = vector.shape_cast %145 : vector<1x8x288xf32> to vector<8x288xf32>
    %147 = vector.shape_cast %144 : vector<8x288xf32> to vector<1x8x288xf32>
    tpu.vector_store %arg6[%c0_106, %c0_107, %c0_108], %147 {strides = array<i32>} : memref<1x8x288xf32, #tpu.memory_space<vmem>>, vector<1x8x288xf32>,
    return
  }
  func.func @transform_0(%arg0: i32) -> (i32, i32, i32) {
    %c0_i32 = arith.constant 0 : i32
    %c0_i32_0 = arith.constant 0 : i32
    %c0_i32_1 = arith.constant 0 : i32
    return %arg0, %c0_i32, %c0_i32_0 : i32, i32, i32
  }
  func.func @transform_1(%arg0: i32) -> (i32, i32) {
    %c0_i32 = arith.constant 0 : i32
    %c0_i32_0 = arith.constant 0 : i32
    %c0_i32_1 = arith.constant 0 : i32
    return %c0_i32, %c0_i32_0 : i32, i32
  }
  func.func @transform_2(%arg0: i32) -> (i32, i32) {
    %c0_i32 = arith.constant 0 : i32
    %c0_i32_0 = arith.constant 0 : i32
    %c0_i32_1 = arith.constant 0 : i32
    return %c0_i32, %c0_i32_0 : i32, i32
  }
  func.func @transform_3(%arg0: i32) -> (i32, i32) {
    %c0_i32 = arith.constant 0 : i32
    %c0_i32_0 = arith.constant 0 : i32
    %c0_i32_1 = arith.constant 0 : i32
    return %c0_i32, %c0_i32_0 : i32, i32
  }
  func.func @transform_4(%arg0: i32) -> (i32, i32) {
    %c0_i32 = arith.constant 0 : i32
    %c0_i32_0 = arith.constant 0 : i32
    %c0_i32_1 = arith.constant 0 : i32
    return %c0_i32, %c0_i32_0 : i32, i32
  }
  func.func @transform_5(%arg0: i32) -> (i32, i32, i32) {
    %c0_i32 = arith.constant 0 : i32
    %c0_i32_0 = arith.constant 0 : i32
    %c0_i32_1 = arith.constant 0 : i32
    return %arg0, %c0_i32, %c0_i32_0 : i32, i32, i32
  }
}

</mosaic_0001>

<bundles_post_ra>
// kernel: tpu_custom_call.1
= control target key start
LH: loop header
LB: loop body
LE: loop exit
PB: predicated region body
PF: predicated region fallthrough
CT: control target
= control target key end

     0   :  { %10 = vsyncpa [#allocation5], 0  ;;  %s1839_s0 = inlined_call_operand.vmem [shape: bf16[2,6,342], index: 0, kind: input, shape index: {}]   ;;  %s1840_s1 = inlined_call_operand.vmem [shape: bf16[16,72], index: 1, kind: input, shape index: {}]   ;;  %s1841_s2 = inlined_call_operand.vmem [shape: f32[16,1], index: 2, kind: input, shape index: {}]   ;;  %s1842_s3 = inlined_call_operand.vmem [shape: bf16[8,72], index: 3, kind: input, shape index: {}]   ;;  %s1843_s4 = inlined_call_operand.vmem [shape: f32[8,1], index: 4, kind: input, shape index: {}]   ;;  %s1844_s5 = inlined_call_operand.hbm [shape: f32[2,8,288], index: 5, kind: output, shape index: {}]  }
   0x1   :  { %12 = vsyncpa [#allocation5 + $0x1], 0  ;;  %s1471_s18 = smov 0   ;;  %s1473_s19 = smov 0  }
   0x2   :  { %s1475_s20 = smov 0   ;;  %s1477_s21 = smov 0  }
   0x3 LB: > { %s1492_s22 = sadd.s32 4294967295, %s1426_s21   ;;  %s1185_s23 = sadd.s32 4294967294, %s1426_s21   ;;  %s1426_s21 = sphi %s1477_s21, %s1869_s21   ;;  %s1422_s20 = sphi %s1475_s20, %s1868_s20   ;;  %s1418_s19 = sphi %s1473_s19, %s1867_s19   ;;  %s1414_s18 = sphi %s1471_s18, %s1866_s18  }
   0x4   : > { %s1496_s24 = sadd.s32 1, %s1426_s21   ;;  %s135_s25 = sadd.s32 1, %s1422_s20 }
   0x5   : > { %s132_s26 = ssub.s32 %s1426_s21, %s1496_s24  ;;  %p145_p0 = scmp.ne.s32.totalorder %s1422_s20, %s1418_s19 }
   0x6   : > { %p133_p1 = scmp.eq.s32.totalorder %s132_s26, 0  ;;  %p146_p2 = scmp.eq.s32.totalorder %s1492_s22, 1 }
   0x7   : > { %p151_p3 = scmp.ne.s32.totalorder %s1418_s19, %s1414_s18  ;;  %p152_p4 = scmp.eq.s32.totalorder %s1185_s23, 1 }
   0x8   : > { %s1507_s27 = scalar_select %p133_p1, %s1422_s20, %s135_s25  }
   0x9   : > { %p1509_p5 = por %p146_p2, %p145_p0  ;;  %p1513_p6 = por %p152_p4, %p151_p3 }
   0xa   : > { %p1188_p7 = scmp.ge.s32.totalorder %s1426_s21, 1  ;;  %p190_p8 = scmp.lt.s32.totalorder %s1426_s21, 3 }
   0xc   : > { %p191_p9 = pnand %p1188_p7, %p190_p8 }
   0xd   : > { %p218_p10 = scmp.lt.s32.totalorder (!%p191_p9), %s1492_s22, 1  ;;  %s1429_s10 = smov (!%p191_p9), 90  }
   0xe   : > { %194 = sbr.rel (%p191_p9) target bundleno = 1229 (0x4cd), region = 40  ;;  %s1430_s11 = smov (!%p191_p9), 92  }
   0xf   : > { %s1432_s12 = smov (!%p191_p9), 91   ;;  %s1433_s13 = smov (!%p191_p9), 109  }
  0x10   : > { %s1434_s14 = smov (!%p191_p9), 108   ;;  %s1435_s15 = smov (!%p191_p9), 126  }
  0x11   : > { %s1436_s16 = smov (!%p191_p9), 110   ;;  %s1437_s17 = smov (!%p191_p9), 127  }
  0x13   : > { %vm280_vm0 = vcmask 257024   ;;  %v1428_v0 = vmov 0   ;;  %s219_s30 = scalar_select %p218_p10, %s1492_s22, 1  ;;  %v1431_v5 = vmov 0.0   ;;  %vm304_vm1 = vcmask 256000   ;;  %v463_v20 = vld [vmem:[%s1841_s2] sm:$0xff] }
  0x14   : > { %296 = vst [vmem:[#allocation3 + $0x60] sm:$0xff] %v1428_v0  ;;  %297 = vst.msk [vmem:[#allocation3 + $0x68] sm:$0xf] %vm280_vm0, %v1428_v0  ;;  %598 = vmatprep.mubr.bf16.mxu0 %v1428_v0  ;;  %1334 = vset.pattern.permute.xlu0 %v1428_v0  ;;  %vm1438_vm2 = vmmov 0   ;;  %vm316_vm3 = vcmask 1043456   ;;  %vm437_vm4 = vcmask 736256  }
  0x15   : > { %279 = vst [vmem:[#allocation3] sm:$0xff] %v1428_v0  ;;  %281 = vst.msk [vmem:[#allocation3 + $0x8] sm:$0xf] %vm280_vm0, %v1428_v0  ;;  %1335 = vset.pattern.permute.xlu1 %v1428_v0  ;;  %s1275_s6 = smul.u32 12, %s219_s30  ;;  %1246 = vmatprep.subr.bf16.mxu1 %v1431_v5  ;;  %vm403_vm5 = vcmask 752640   ;;  %vm420_vm6 = vcmask 744448  }
  0x16   : > { %282 = vst [vmem:[#allocation3 + $0xc] sm:$0xff] %v1428_v0  ;;  %283 = vst.msk [vmem:[#allocation3 + $0x14] sm:$0xf] %vm280_vm0, %v1428_v0  ;;  %1256 = vmatprep.mubr.msk.bf16.mxu1 %vm1438_vm2, %v1431_v5  ;;  %vm1850_vm7 = vcmask 891904   ;;  %vm1849_vm8 = vcmask 883712   ;;  %vm1848_vm9 = vcmask 1031168  }
  0x17   : > { %284 = vst [vmem:[#allocation3 + $0x18] sm:$0xff] %v1428_v0  ;;  %285 = vst.msk [vmem:[#allocation3 + $0x20] sm:$0xf] %vm280_vm0, %v1428_v0  ;;  %s1557_s9 = scalar_lea.vmem %s1839_s0, %s1275_s6  ;;  %vm1847_vm10 = vcmask 900096   ;;  %vm1846_vm11 = vcmask 1039360   ;;  %vm1845_vm12 = vcmask 588800  }
  0x18   : > { %286 = vst [vmem:[#allocation3 + $0x24] sm:$0xff] %v1428_v0  ;;  %287 = vst.msk [vmem:[#allocation3 + $0x2c] sm:$0xf] %vm280_vm0, %v1428_v0  ;;  %v426_v1 = vld [vmem:[%s1557_s9] sm:$0x77]  ;;  %s1439_s6 = smov 19  }
  0x19   : > { %288 = vst [vmem:[#allocation3 + $0x30] sm:$0xff] %v1428_v0  ;;  %289 = vst.msk [vmem:[#allocation3 + $0x38] sm:$0xf] %vm280_vm0, %v1428_v0  ;;  %v392_v2 = vld [vmem:[%s1557_s9] sm:$0x77]  ;;  %430 = vrot.lane.b32.xlu0 %v426_v1, %s1429_s10 }
  0x1a   : > { %290 = vst [vmem:[#allocation3 + $0x3c] sm:$0xff] %v1428_v0  ;;  %291 = vst.msk [vmem:[#allocation3 + $0x44] sm:$0xf] %vm280_vm0, %v1428_v0  ;;  %396 = vrot.lane.b32.xlu1 %v392_v2, %s1430_s11  ;;  %v427_v3 = vld [vmem:[%s1557_s9 + $0x8] sm:$0x7] }
  0x1b   : > { %292 = vst [vmem:[#allocation3 + $0x48] sm:$0xff] %v1428_v0  ;;  %293 = vst.msk [vmem:[#allocation3 + $0x50] sm:$0xf] %vm280_vm0, %v1428_v0  ;;  %v393_v4 = vld [vmem:[%s1557_s9 + $0x8] sm:$0x7] }
  0x1c   : > { %294 = vst [vmem:[#allocation3 + $0x54] sm:$0xff] %v1428_v0  ;;  %295 = vst.msk [vmem:[#allocation3 + $0x5c] sm:$0xf] %vm280_vm0, %v1428_v0  ;;  %v409_v6 = vld [vmem:[%s1557_s9] sm:$0x77] }
  0x1d   : > { %298 = vst [vmem:[#allocation2] sm:$0xff] %v1428_v0  ;;  %432 = vrot.lane.b32.xlu0 %v427_v3, %s1429_s10  ;;  %v410_v7 = vld [vmem:[%s1557_s9 + $0x8] sm:$0x7]  ;;  %v358_v9 = vld [vmem:[%s1557_s9] sm:$0x77] }
  0x1e   : > { %398 = vrot.lane.b32.xlu1 %v393_v4, %s1430_s11  ;;  %v359_v8 = vld [vmem:[%s1557_s9 + $0x8] sm:$0x7]  ;;  %v375_v11 = vld [vmem:[%s1557_s9] sm:$0x77] }
  0x1f   : > { %v376_v10 = vld [vmem:[%s1557_s9 + $0x8] sm:$0x7]  ;;  %v324_v14 = vld [vmem:[%s1557_s9] sm:$0x77] }
  0x20   : > { %v302_v12 = vld [vmem:[%s1557_s9 + $0x8] sm:$0x7]  ;;  %v301_v15 = vld [vmem:[%s1557_s9] sm:$0x77] }
  0x21   : > { %413 = vrot.lane.b32.xlu0 %v409_v6, %s1432_s12  ;;  %305 = vst.msk [vmem:[#allocation3 + $0x8] sm:$0x7] %vm304_vm1, %v302_v12  ;;  %v325_v13 = vld [vmem:[%s1557_s9 + $0x8] sm:$0x7]  ;;  %303 = vst [vmem:[#allocation3] sm:$0x77] %v301_v15 }
  0x22   : > { %415 = vrot.lane.b32.xlu1 %v410_v7, %s1432_s12  ;;  %v342_v16 = vld [vmem:[%s1557_s9 + $0x8] sm:$0x7]  ;;  %v341_v17 = vld [vmem:[%s1557_s9] sm:$0x77] }
  0x23   : > { %v307_v18 = vld [vmem:[%s1557_s9 + $0x8] sm:$0x7]  ;;  %v306_v19 = vld [vmem:[%s1557_s9] sm:$0x77] }
  0x25   : > { %362 = vrot.lane.b32.xlu0 %v358_v9, %s1433_s13 }
  0x26   : > { %364 = vrot.lane.b32.xlu1 %v359_v8, %s1433_s13 }
  0x29   : > { %379 = vrot.lane.b32.xlu0 %v375_v11, %s1434_s14 }
  0x2a   : > { %381 = vrot.lane.b32.xlu1 %v376_v10, %s1434_s14 }
  0x2d   : > { %328 = vrot.lane.b32.xlu0 %v324_v14, %s1435_s15 }
  0x2e   : > { %330 = vrot.lane.b32.xlu1 %v325_v13, %s1435_s15 }
  0x31   : > { %345 = vrot.lane.b32.xlu0 %v341_v17, %s1436_s16 }
  0x32   : > { %347 = vrot.lane.b32.xlu1 %v342_v16, %s1436_s16 }
  0x35   : > { %310 = vrot.lane.b32.xlu0 %v306_v19, %s1437_s17 }
  0x36   : > { %312 = vrot.lane.b32.xlu1 %v307_v18, %s1437_s17 }
  0x39   : > { %467 = vperm.xlu0 %1334, %v463_v20  }
  0x8b   : > { %v431_v21 = vpop.permute.xlu0 %430 }
  0x8c   : > { %v397_v22 = vpop.permute.xlu1 %396  ;;  %v434_v25 = vrot.slane %v431_v21, 4 }
  0x8d   : > { %v400_v26 = vrot.slane %v397_v22, 4 }
  0x8f   : > { %v433_v23 = vpop.permute.xlu0 %432 }
  0x90   : > { %v399_v24 = vpop.permute.xlu1 %398  ;;  %v435_v27 = vrot.slane %v433_v23, 4  ;;  %442 = vst.msk [vmem:[#allocation3 + $0x68] sm:$0x7] %vm304_vm1, %v433_v23 }
  0x91   : > { %v401_v28 = vrot.slane %v399_v24, 4  ;;  %408 = vst.msk [vmem:[#allocation3 + $0x50] sm:$0x7] %vm304_vm1, %v399_v24 }
  0x92   : > { %v436_v29 = vsel %vm316_vm3, %v434_v25, %v435_v27  ;;  %v1354_v25 = vld [vmem:[%s1840_s1] sm:$0xff]  }
  0x93   : > { %v402_v30 = vsel %vm316_vm3, %v400_v26, %v401_v28  ;;  %v438_v31 = vsel %vm437_vm4, %v431_v21, %v436_v29  ;;  %v414_v33 = vpop.permute.xlu0 %413  ;;  %v224_v28 = vlaneseq }
  0x94   : > { %v404_v32 = vsel %vm403_vm5, %v397_v22, %v402_v30  ;;  %v416_v34 = vpop.permute.xlu1 %415  ;;  %441 = vst [vmem:[#allocation3 + $0x60] sm:$0x77] %v438_v31  ;;  %v417_v35 = vrot.slane %v414_v33, 4 }
  0x95   : > { %407 = vst [vmem:[#allocation3 + $0x48] sm:$0x77] %v404_v32  ;;  %v418_v36 = vrot.slane %v416_v34, 4  ;;  %425 = vst.msk [vmem:[#allocation3 + $0x5c] sm:$0x7] %vm304_vm1, %v416_v34  ;;  %v225_v29 = vand.u32 127, %v224_v28 }
  0x97   : > { %v419_v37 = vsel %vm316_vm3, %v417_v35, %v418_v36  ;;  %v363_v40 = vpop.permute.xlu0 %362  ;;  %v1336_v41 = vld [vmem:[#allocation3 + $0x68] ss:$0 sps:$4 sm:$0xff]   ;;  %v227_v30 = vadd.s32 256, %v225_v29  ;;  %v1643_v34 = vmul.u32.u64.low 3817748708, %v225_v29  ;;  %v1644_v35 = vmul.u32.u64.high 3817748708, %v225_v29, %v1643_v34 }
  0x98   : > { %v421_v38 = vsel %vm420_vm6, %v414_v33, %v419_v37  ;;  %v365_v39 = vpop.permute.xlu1 %364  ;;  %v366_v43 = vrot.slane %v363_v40, 4  ;;  %v564_v44 = vsel %vm316_vm3, %v1336_v41, 0  ;;  %v226_v33 = vadd.s32 128, %v225_v29 }
  0x99   : > { %424 = vst [vmem:[#allocation3 + $0x54] sm:$0x77] %v421_v38  ;;  %v367_v42 = vrot.slane %v365_v39, 4  ;;  %374 = vst.msk [vmem:[#allocation3 + $0x38] sm:$0x7] %vm304_vm1, %v365_v39  ;;  %1247 = vmatpush3.bf16.msra.mxu1 %v564_v44  ;;  %v234_v39 = vshrl.u32 %v1644_v35, 4 }
  0x9a   : > { %1248 = vmatprep.subr.bf16.mxu1 %v1431_v5  ;;  %v1640_v31 = vmul.u32.u64.low 3817748708, %v227_v30  ;;  %v1641_v32 = vmul.u32.u64.high 3817748708, %v227_v30, %v1640_v31  ;;  %v1646_v36 = vmul.u32.u64.low 3817748708, %v226_v33  ;;  %v1647_v37 = vmul.u32.u64.high 3817748708, %v226_v33, %v1646_v36 }
  0x9b   : > { %v368_v45 = vsel %vm316_vm3, %v366_v43, %v367_v42  ;;  %v380_v48 = vpop.permute.xlu0 %379  ;;  %v461_v49 = vld [vmem:[#allocation3 + $0x60] sm:$0xff]  ;;  %v235_v42 = vmul.u32 18, %v234_v39 }
  0x9c   : > { %v370_v46 = vsel %vm1850_vm7, %v363_v40, %v368_v45  ;;  %v382_v47 = vpop.permute.xlu1 %381  ;;  %v1339_v50 = vld [vmem:[#allocation3 + $0x50] ss:$12 sps:$4 sm:$0xff]   ;;  %v383_v52 = vrot.slane %v380_v48, 4  ;;  %v1204_v53 = vcombine.high %v461_v49, %v461_v49  ;;  %v1203_v54 = vcombine.low %v461_v49, %v461_v49 }
  0x9d   : > { %373 = vst [vmem:[#allocation3 + $0x30] sm:$0x77] %v370_v46  ;;  %v384_v51 = vrot.slane %v382_v47, 4  ;;  %391 = vst.msk [vmem:[#allocation3 + $0x44] sm:$0x7] %vm304_vm1, %v382_v47  ;;  %1249 = vmatpush3.bf16.msra.mxu1 %v1339_v50  ;;  %v256_v38 = vshrl.u32 %v1641_v32, 4  ;;  %v236_v45 = vsub.s32 %v225_v29, %v235_v42 }
  0x9e   : > { %1206 = vmatprep.subr.msk.bf16.mxu0 %vm316_vm3, %v1204_v53  ;;  %v558_v56 = vsel %vm316_vm3, %v1203_v54, 0  ;;  %1250 = vmatprep.subr.bf16.mxu1 %v1431_v5  ;;  %v245_v41 = vshrl.u32 %v1647_v37, 4 }
  0x9f   : > { %v385_v55 = vsel %vm316_vm3, %v383_v52, %v384_v51  ;;  %573 = vmatpush1.bf16.msra.mxu0 %v558_v56  ;;  %v329_v59 = vpop.permute.xlu0 %328  ;;  %v257_v40 = vmul.u32 18, %v256_v38  ;;  %vm261_vm15 = vcmp.ne.s32.totalorder %v236_v45, 0 }
  0xa0   : > { %v387_v57 = vsel %vm1849_vm8, %v380_v48, %v385_v55  ;;  %v331_v58 = vpop.permute.xlu1 %330  ;;  %v1340_v60 = vld [vmem:[#allocation3 + $0x4c] ss:$12 sps:$4 sm:$0xff]   ;;  %v332_v62 = vrot.slane %v329_v59, 4  ;;  %v1342_v63 = vld [vmem:[#allocation3 + $0x48] ss:$12 sps:$4 sm:$0xff]   ;;  %v246_v44 = vmul.u32 18, %v245_v41 }
  0xa1   : > { %390 = vst [vmem:[#allocation3 + $0x3c] sm:$0x77] %v387_v57  ;;  %v333_v61 = vrot.slane %v331_v58, 4  ;;  %340 = vst.msk [vmem:[#allocation3 + $0x20] sm:$0x7] %vm304_vm1, %v331_v58  ;;  %574 = vmatprep.subr.bf16.mxu0 %v1340_v60  ;;  %v258_v43 = vsub.s32 %v227_v30, %v257_v40  ;;  %v270_v48 = vadd.s32 18, %v236_v45 }
  0xa2   : > { %v247_v46 = vsub.s32 %v226_v33, %v246_v44 }
  0xa3   : > { %v334_v1 = vsel %vm316_vm3, %v332_v62, %v333_v61  ;;  %575 = vmatpush1.bf16.msra.mxu0 %v1342_v63  ;;  %v346_v4 = vpop.permute.xlu0 %345  ;;  %vm263_vm13 = vcmp.ne.s32.totalorder %v258_v43, 0  ;;  %vm266_vm14 = vcmp.lt.s32.totalorder %v258_v43, 0  ;;  %v272_v47 = vadd.s32 18, %v258_v43 }
  0xa4   : > { %v336_v2 = vsel %vm1848_vm9, %v329_v59, %v334_v1  ;;  %v348_v3 = vpop.permute.xlu1 %347  ;;  %v1343_v6 = vld [vmem:[#allocation3 + $0x38] ss:$12 sps:$4 sm:$0xff]   ;;  %v349_v8 = vrot.slane %v346_v4, 4  ;;  %v271_v50 = vadd.s32 18, %v247_v46 }
  0xa5   : > { %339 = vst [vmem:[#allocation3 + $0x18] sm:$0x77] %v336_v2  ;;  %v350_v7 = vrot.slane %v348_v3, 4  ;;  %357 = vst.msk [vmem:[#allocation3 + $0x2c] sm:$0x7] %vm304_vm1, %v348_v3  ;;  %1251 = vmatpush3.bf16.msra.mxu1 %v1343_v6 }
  0xa6   : > { %1252 = vmatprep.subr.bf16.mxu1 %v1431_v5 }
  0xa7   : > { %v351_v9 = vsel %vm316_vm3, %v349_v8, %v350_v7  ;;  %v311_v12 = vpop.permute.xlu0 %310 }
  0xa8   : > { %v353_v10 = vsel %vm1847_vm10, %v346_v4, %v351_v9  ;;  %v313_v11 = vpop.permute.xlu1 %312  ;;  %v1344_v13 = vld [vmem:[#allocation3 + $0x34] ss:$12 sps:$4 sm:$0xff]   ;;  %v1346_v14 = vld [vmem:[#allocation3 + $0x30] ss:$12 sps:$4 sm:$0xff]   ;;  %v314_v16 = vrot.slane %v311_v12, 4 }
  0xa9   : > { %356 = vst [vmem:[#allocation3 + $0x24] sm:$0x77] %v353_v10  ;;  %v315_v15 = vrot.slane %v313_v11, 4  ;;  %323 = vst.msk [vmem:[#allocation3 + $0x14] sm:$0x7] %vm304_vm1, %v313_v11  ;;  %576 = vmatprep.subr.bf16.mxu0 %v1344_v13  ;;  %vm264_vm1 = vcmp.lt.s32.totalorder %v236_v45, 0 }
  0xaa   : > { %577 = vmatpush1.bf16.msra.mxu0 %v1346_v14  ;;  %vm267_vm10 = vmand %vm264_vm1, %vm261_vm15  ;;  %vm746_vm1 = vcmask 412672  }
  0xab   : > { %v317_v17 = vsel %vm316_vm3, %v314_v16, %v315_v15  ;;  %v273_v54 = vsel %vm267_vm10, %v270_v48, %v236_v45  ;;  %vm663_vm10 = vcmask 261120  }
  0xac   : > { %v319_v18 = vsel %vm1846_vm11, %v311_v12, %v317_v17  ;;  %v1347_v19 = vld [vmem:[#allocation3 + $0x20] ss:$12 sps:$4 sm:$0xff]   ;;  %v449_v20 = vld [vmem:[#allocation3 + $0x18] sm:$0xff]  ;;  %vm265_vm11 = vcmp.lt.s32.totalorder %v247_v46, 0  ;;  %vm1656_vm7 = vcmp.lt.s32.totalorder %v273_v54, 16 }
  0xad   : > { %322 = vst [vmem:[#allocation3 + $0xc] sm:$0x77] %v319_v18  ;;  %1253 = vmatpush3.bf16.msra.mxu1 %v1347_v19  ;;  %v464_v54 = vld [vmem:[%s1841_s2 + $0x8] sm:$0xff] }
  0xae   : > { %1254 = vmatprep.subr.bf16.mxu1 %v1431_v5 }
  0xb0   : > { %v451_v21 = vld [vmem:[#allocation3 + $0x24] sm:$0xff] }
  0xb1   : > { %v1348_v22 = vld [vmem:[#allocation3 + $0x1c] ss:$12 sps:$4 sm:$0xff]   ;;  %v1194_v24 = vcombine.low %v449_v20, %v451_v21 }
  0xb2   : > { %v1350_v23 = vld [vmem:[#allocation3 + $0x8] ss:$12 sps:$4 sm:$0xff]   ;;  %578 = vmatprep.subr.bf16.mxu0 %v1348_v22 }
  0xb3   : > { %1255 = vmatpush3.bf16.msra.mxu1 %v1350_v23  ;;  %579 = vmatpush1.bf16.msra.mxu0 %v1194_v24 }
  0xb4   : > { %v1351_v26 = vld [vmem:[#allocation3 + $0x4] ss:$12 sps:$4 sm:$0xff]   ;;  %v1353_v27 = vld [vmem:[#allocation3] ss:$12 sps:$4 sm:$0xff]   ;;  %1260 = vmatprep.subr.bf16.mxu1 %v1431_v5  ;;  %v468_v52 = vpop.permute.xlu0 %467 }
  0xb5   : > { %580 = vmatprep.subr.bf16.mxu0 %v1351_v26 }
  0xb6   : > { %1257 = vmatmul.mubr.msk.bf16.vlgmr.msra.gmra.mxu1 %vm1845_vm12, %v1354_v25 }
  0xb7   : > { %581 = vmatpush1.bf16.msra.mxu0 %v1353_v27  ;;  %1270 = vmatprep.mubr.msk.bf16.mxu1 %vm1438_vm2, %v1431_v5  ;;  %vm269_vm2 = vmand %vm266_vm14, %vm263_vm13  ;;  %vm743_vm13 = vcmask 1047556   ;;  %vm737_vm14 = vcmask 154624  }
  0xb8   : > { %v275_v49 = vsel %vm269_vm2, %v272_v47, %v258_v43  ;;  %vm1862_vm2 = vcmask 900096  }
  0xb9   : > { %vm1652_vm8 = vcmp.lt.s32.totalorder %v275_v49, 16 }
  0xba   : > { %1207 = vmatmul.mubr.msk.bf16.vlgmr.msra.gmra.mxu0 %vm1845_vm12, %v1354_v25  ;;  %vm262_vm12 = vcmp.ne.s32.totalorder %v247_v46, 0 }
  0xbb   : > { %1021 = vmatprep.mubr.bf16.mxu0 %v1428_v0  ;;  %vm268_vm9 = vmand %vm265_vm11, %vm262_vm12  ;;  %vm742_vm12 = vcmask 1043608  }
  0xbc   : > { %v274_v57 = vsel %vm268_vm9, %v271_v50, %v247_v46  ;;  %vm299_vm9 = vcmask 699392   ;;  %vm744_vm15 = vmor %vm743_vm13, %vm742_vm12 }
  0xbd   : > { %vm1664_vm11 = vcmp.lt.s32.totalorder %v274_v57, 16  ;;  %300 = vst.msk [vmem:[#allocation2 + $0x8] sm:$0xf] %vm299_vm9, %v1428_v0  ;;  %vm1863_vm9 = vcmask 1039360  }
 0x176   : > { %v643_v51 = vpop.f32.mrf.mxu1 }
 0x177   : > { %v644_v53 = vadd.f32 %v643_v51, %v468_v52  ;;  %v899_v51 = vld [vmem:[%s1843_s4] sm:$0xff] }
 0x178   : > { %v1258_v56 = vpop.f32.mrf.mxu1 }
 0x179   : > { %v658_v61 = vsel %vm1652_vm8, %v644_v53, 0.0 }
 0x17a   : > { %v600_v59 = vpop.f32.mrf.mxu0  ;;  %v1660_v60 = vpop.f32.mrf.mxu1  ;;  %v675_v6 = vmul.f32 %v658_v61, %v658_v61  ;;  %v664_v8 = vsel %vm663_vm10, %v658_v61, 0.0 }
 0x17b   : > { %v601_v62 = vadd.f32 %v600_v59, %v468_v52 }
 0x17c   : > { %v602_v1 = vpop.f32.mrf.mxu0  ;;  %v1259_v2 = vpop.f32.mrf.mxu1  ;;  %v680_v12 = vsel %vm663_vm10, %v675_v6, 0.0 }
 0x17d   : > { %v656_v3 = vsel %vm1656_vm7, %v601_v62, 0.0  ;;  %v603_v4 = vadd.f32 %v602_v1, %v468_v52 }
 0x17e   : > { %v673_v9 = vmul.f32 %v656_v3, %v656_v3 }
 0x17f   : > { %v657_v7 = vsel %vm1664_vm11, %v603_v4, 0.0 }
 0x180   : > { %v674_v10 = vmul.f32 %v657_v7, %v657_v7  ;;  %v662_v11 = vadd.f32 %v657_v7, %v656_v3 }
 0x182   : > { %v665_v13 = vadd.f32 %v664_v8, %v662_v11  ;;  %v679_v14 = vadd.f32 %v674_v10, %v673_v9 }
 0x184   : > { %666 = vadd.xlane.f32.xlu1 %v665_v13  ;;  %v681_v15 = vadd.f32 %v680_v12, %v679_v14 }
 0x186   : > { %682 = vadd.xlane.f32.xlu0 %v681_v15 }
 0x20d   : > { %v667_v16 = vpop.xlane.xlu1 %666 }
 0x20e   : > { %v689_v17 = vmul.f32 0.00390625, %v667_v16 }
 0x20f   : > { %v683_v18 = vpop.xlane.xlu0 %682 }
 0x210   : > { %v691_v19 = vmul.f32 0.00390625, %v683_v18  ;;  %v693_v20 = vmul.f32 %v689_v17, %v689_v17  ;;  %v699_v24 = vsub.f32 %v601_v62, %v689_v17  ;;  %v700_v25 = vsub.f32 %v603_v4, %v689_v17 }
 0x211   : > { %v701_v26 = vsub.f32 %v644_v53, %v689_v17 }
 0x212   : > { %v695_v21 = vsub.f32 %v691_v19, %v693_v20 }
 0x214   : > { %v697_v22 = vmax.f32 %v695_v21, 0.0 }
 0x216   : > { %v705_v23 = vadd.f32 1e-05, %v697_v22 }
 0x218   : > { %1360 = vrsqrt.f32 %v705_v23 }
 0x225   : > { %v1361_v27 = vpop.eup %1360 }
 0x226   : > { %v711_v28 = vmul.f32 %v1361_v27, %v701_v26  ;;  %v709_v29 = vmul.f32 %v1361_v27, %v699_v24  ;;  %v710_v30 = vmul.f32 %v1361_v27, %v700_v25 }
 0x228   : > { %v717_v31 = vmax.f32 %v711_v28, 0.0  ;;  %v715_v32 = vmax.f32 %v709_v29, 0.0  ;;  %v716_v33 = vmax.f32 %v710_v30, 0.0 }
 0x22a   : > { %v720_v34 = vsel %vm1652_vm8, %v717_v31, 0.0  ;;  %v718_v35 = vsel %vm1656_vm7, %v715_v32, 0.0  ;;  %v719_v36 = vsel %vm1664_vm11, %v716_v33, 0.0 }
 0x22b   : > { %v1233_v0 = vpack.c.bf16 %v720_v34, %v720_v34  ;;  %v1232_v37 = vpack.c.bf16 %v719_v36, %v718_v35 }
 0x22d   : > { %734 = vrot.lane.b32.xlu0 %v1233_v0, %s1439_s6  ;;  %732 = vrot.lane.b32.xlu1 %v1232_v37, %s1439_s6  ;;  %s1440_s6 = smov [#allocation4]  }
 0x22e   : > { %s1370_s7 = sshll.u32 %s1440_s6, 4  ;;  %s1371_s7 = int_to_ptr.vmem [resolvable:$false] %s1370_s7 }
 0x22f   : > { %s1372_s8 = scalar_lea.vmem %s1371_s7, 768 }
 0x29f   : > { %v733_v38 = vpop.permute.xlu1 %732  ;;  %v735_v40 = vpop.permute.xlu0 %734 }
 0x2a0   : > { %v736_v39 = vrot.slane %v733_v38, 4 }
 0x2a2   : > { %v738_v41 = vsel %vm737_vm14, %v736_v39, %v733_v38  ;;  %v739_v42 = vsel %vm737_vm14, %v736_v39, %v735_v40 }
 0x2a3   : > { %745 = vst.msk [vmem:[#allocation2] sm:$0xff] %vm744_vm15, %v738_v41 }
 0x2a4   : > { %747 = vst.msk [vmem:[#allocation2 + $0x8] sm:$0xf] %vm746_vm1, %v739_v42 }
 0x2aa   : > { %v1681_v43 = vld [vmem:[#allocation2] sm:$0xff] }
 0x2ab   : > { %v749_v44 = vld [vmem:[#allocation2 + $0x8] sm:$0xf]  ;;  %750 = vst [vmem:[#allocation3] sm:$0xff] %v1681_v43  ;;  %868 = vrot.lane.b32.xlu1 %v1681_v43, %s1429_s10  ;;  %836 = vrot.lane.b32.xlu0 %v1681_v43, %s1430_s11 }
 0x2ac   : > { %751 = vst.msk [vmem:[#allocation3 + $0x8] sm:$0xf] %vm280_vm0, %v749_v44  ;;  %v865_v45 = vld [vmem:[#allocation2 + $0x8] sm:$0xf] }
 0x2ad   : > { %v833_v46 = vld [vmem:[#allocation2 + $0x8] sm:$0xf] }
 0x2ae   : > { %v849_v47 = vld [vmem:[#allocation2 + $0x8] sm:$0xf] }
 0x2af   : > { %870 = vrot.lane.b32.xlu1 %v865_v45, %s1429_s10  ;;  %852 = vrot.lane.b32.xlu0 %v1681_v43, %s1432_s12  ;;  %v801_v48 = vld [vmem:[#allocation2 + $0x8] sm:$0xf] }
 0x2b0   : > { %v817_v49 = vld [vmem:[#allocation2 + $0x8] sm:$0xf] }
 0x2b1   : > { %v769_v50 = vld [vmem:[#allocation2 + $0x8] sm:$0xf] }
 0x2b2   : > { %v785_v52 = vld [vmem:[#allocation2 + $0x8] sm:$0xf] }
 0x2b3   : > { %838 = vrot.lane.b32.xlu1 %v833_v46, %s1430_s11  ;;  %804 = vrot.lane.b32.xlu0 %v1681_v43, %s1433_s13  ;;  %v753_v53 = vld [vmem:[#allocation2 + $0x8] sm:$0xf] }
 0x2b7   : > { %854 = vrot.lane.b32.xlu1 %v849_v47, %s1432_s12  ;;  %820 = vrot.lane.b32.xlu0 %v1681_v43, %s1434_s14 }
 0x2bb   : > { %806 = vrot.lane.b32.xlu1 %v801_v48, %s1433_s13  ;;  %772 = vrot.lane.b32.xlu0 %v1681_v43, %s1435_s15  ;;  %s215_s13 = sand.u32 1, %s1418_s19  }
 0x2bf   : > { %822 = vrot.lane.b32.xlu1 %v817_v49, %s1434_s14  ;;  %788 = vrot.lane.b32.xlu0 %v1681_v43, %s1436_s16  ;;  %s1274_s14 = smul.u32 24, %s215_s13 }
 0x2c3   : > { %774 = vrot.lane.b32.xlu1 %v769_v50, %s1435_s15  ;;  %756 = vrot.lane.b32.xlu0 %v1681_v43, %s1437_s17  ;;  %s1282_s15 = smul.u32 384, %s1492_s22  ;;  %s1112_s22 = scalar_lea.sflag [#allocation5], %s215_s13 }
 0x2c5   : > { %s1789_s26 = scalar_lea.hbm %s1844_s5, %s1282_s15 }
 0x2c7   : > { %790 = vrot.lane.b32.xlu1 %v785_v52, %s1436_s16  ;;  %902 = vperm.xlu0 %1334, %v899_v51   ;;  %s217_s16 = scalar_lea.vmem [#allocation4], %s1274_s14 }
 0x2cb   : > { %758 = vrot.lane.b32.xlu1 %v753_v53, %s1437_s17  ;;  %s1126_s17 = sshll.u32 %s217_s16, 4  ;;  %s1791_s17 = int_to_ptr.vmem [resolvable:$true] %s1126_s17 }
 0x2cc   : > { %s1366_s30 = scalar_lea.vmem %s1791_s17, 384  ;;  %p1373_p0 = scmp.lt.s32.totalorder %s1791_s17, %s1371_s7 }
 0x2cd   : > { %p1367_p11 = scmp.ne.s32.totalorder %s1791_s17, %s1366_s30  ;;  %p1374_p1 = scmp.lt.s32.totalorder %s1372_s8, %s1366_s30 }
 0x2cf   : > { %472 = vperm.xlu1 %1335, %v464_v54   ;;  %p1368_p12 = pnand %p1367_p11, %p1509_p5  ;;  %p1375_p2 = por %p1374_p1, %p1373_p0 }
 0x2d1   : > { %p1369_p13 = pneg %p1368_p12 }
 0x2d3   : > { %p1376_p3 = pnand %p1375_p2, %p1369_p13 }
 0x31d   : > { %v869_v56 = vpop.permute.xlu1 %868  ;;  %v837_v57 = vpop.permute.xlu0 %836 }
 0x31e   : > { %v872_v62 = vrot.slane %v869_v56, 4  ;;  %v840_v7 = vrot.slane %v837_v57, 4 }
 0x321   : > { %v871_v59 = vpop.permute.xlu1 %870  ;;  %v853_v61 = vpop.permute.xlu0 %852 }
 0x322   : > { %v873_v1 = vrot.slane %v871_v59, 4  ;;  %879 = vst.msk [vmem:[#allocation3 + $0x68] sm:$0xf] %vm280_vm0, %v871_v59  ;;  %v856_v17 = vrot.slane %v853_v61, 4 }
 0x324   : > { %v874_v2 = vsel %vm316_vm3, %v872_v62, %v873_v1 }
 0x325   : > { %v875_v3 = vsel %vm437_vm4, %v869_v56, %v874_v2  ;;  %v839_v4 = vpop.permute.xlu1 %838  ;;  %v805_v6 = vpop.permute.xlu0 %804  ;;  %vm1859_vm4 = vcmask 891904  }
 0x326   : > { %878 = vst [vmem:[#allocation3 + $0x60] sm:$0xff] %v875_v3  ;;  %v841_v8 = vrot.slane %v839_v4, 4  ;;  %847 = vst.msk [vmem:[#allocation3 + $0x50] sm:$0xf] %vm280_vm0, %v839_v4  ;;  %v1224_v9 = vcombine.high %v875_v3, %v875_v3  ;;  %v1223_v10 = vcombine.low %v875_v3, %v875_v3  ;;  %v808_v23 = vrot.slane %v805_v6, 4  ;;  %v604_v4 = vpop.f32.mrf.mxu0 }
 0x327   : > { %v880_v3 = vld [vmem:[%s1842_s3] sm:$0xf] }
 0x328   : > { %v842_v11 = vsel %vm316_vm3, %v840_v7, %v841_v8  ;;  %1226 = vmatprep.subr.msk.bf16.mxu0 %vm316_vm3, %v1224_v9  ;;  %v981_v12 = vsel %vm316_vm3, %v1223_v10, 0 }
 0x329   : > { %v843_v13 = vsel %vm403_vm5, %v837_v57, %v842_v11  ;;  %v855_v14 = vpop.permute.xlu1 %854  ;;  %v821_v15 = vpop.permute.xlu0 %820  ;;  %v1355_v16 = vld [vmem:[#allocation3 + $0x68] ss:$0 sps:$4 sm:$0xff]   ;;  %996 = vmatpush1.bf16.msra.mxu0 %v981_v12  ;;  %vm1860_vm5 = vcmask 883712  }
 0x32a   : > { %846 = vst [vmem:[#allocation3 + $0x48] sm:$0xff] %v843_v13  ;;  %v857_v18 = vrot.slane %v855_v14, 4  ;;  %863 = vst.msk [vmem:[#allocation3 + $0x5c] sm:$0xf] %vm280_vm0, %v855_v14  ;;  %v987_v19 = vsel %vm316_vm3, %v1355_v16, 0  ;;  %v824_v32 = vrot.slane %v821_v15, 4 }
 0x32b   : > { %1261 = vmatpush3.bf16.msra.mxu1 %v987_v19 }
 0x32c   : > { %v858_v20 = vsel %vm316_vm3, %v856_v17, %v857_v18  ;;  %1262 = vmatprep.subr.bf16.mxu1 %v1431_v5 }
 0x32d   : > { %v859_v21 = vsel %vm420_vm6, %v853_v61, %v858_v20  ;;  %v807_v22 = vpop.permute.xlu1 %806  ;;  %v773_v27 = vpop.permute.xlu0 %772  ;;  %vm1861_vm6 = vcmask 1031168  }
 0x32e   : > { %862 = vst [vmem:[#allocation3 + $0x54] sm:$0xff] %v859_v21  ;;  %v809_v24 = vrot.slane %v807_v22, 4  ;;  %815 = vst.msk [vmem:[#allocation3 + $0x38] sm:$0xf] %vm280_vm0, %v807_v22  ;;  %v1220_v25 = vcombine.low %v843_v13, %v859_v21  ;;  %v1221_v26 = vcombine.high %v843_v13, %v859_v21  ;;  %v776_v37 = vrot.slane %v773_v27, 4 }
 0x330   : > { %v810_v28 = vsel %vm316_vm3, %v808_v23, %v809_v24  ;;  %997 = vmatprep.subr.bf16.mxu0 %v1221_v26 }
 0x331   : > { %v811_v29 = vsel %vm1859_vm4, %v805_v6, %v810_v28  ;;  %v823_v30 = vpop.permute.xlu1 %822  ;;  %v1356_v31 = vld [vmem:[#allocation3 + $0x50] ss:$12 sps:$4 sm:$0xff]   ;;  %998 = vmatpush1.bf16.msra.mxu0 %v1220_v25  ;;  %v789_v36 = vpop.permute.xlu0 %788 }
 0x332   : > { %814 = vst [vmem:[#allocation3 + $0x30] sm:$0xff] %v811_v29  ;;  %v825_v33 = vrot.slane %v823_v30, 4  ;;  %831 = vst.msk [vmem:[#allocation3 + $0x44] sm:$0xf] %vm280_vm0, %v823_v30  ;;  %1263 = vmatpush3.bf16.msra.mxu1 %v1356_v31  ;;  %v792_v46 = vrot.slane %v789_v36, 4  ;;  %v606_v6 = vpop.f32.mrf.mxu0 }
 0x333   : > { %1264 = vmatprep.subr.bf16.mxu1 %v1431_v5 }
 0x334   : > { %v826_v34 = vsel %vm316_vm3, %v824_v32, %v825_v33 }
 0x335   : > { %v827_v35 = vsel %vm1860_vm5, %v821_v15, %v826_v34  ;;  %v775_v0 = vpop.permute.xlu1 %774  ;;  %v757_v48 = vpop.permute.xlu0 %756 }
 0x336   : > { %830 = vst [vmem:[#allocation3 + $0x3c] sm:$0xff] %v827_v35  ;;  %v777_v38 = vrot.slane %v775_v0, 4  ;;  %783 = vst.msk [vmem:[#allocation3 + $0x20] sm:$0xf] %vm280_vm0, %v775_v0  ;;  %v1217_v39 = vcombine.low %v811_v29, %v827_v35  ;;  %v1218_v40 = vcombine.high %v811_v29, %v827_v35  ;;  %v760_v52 = vrot.slane %v757_v48, 4 }
 0x338   : > { %v778_v41 = vsel %vm316_vm3, %v776_v37, %v777_v38  ;;  %999 = vmatprep.subr.bf16.mxu0 %v1218_v40 }
 0x339   : > { %v779_v42 = vsel %vm1861_vm6, %v773_v27, %v778_v41  ;;  %v791_v44 = vpop.permute.xlu1 %790  ;;  %v1357_v45 = vld [vmem:[#allocation3 + $0x38] ss:$12 sps:$4 sm:$0xff]   ;;  %1000 = vmatpush1.bf16.msra.mxu0 %v1217_v39 }
 0x33a   : > { %782 = vst [vmem:[#allocation3 + $0x18] sm:$0xff] %v779_v42  ;;  %v793_v47 = vrot.slane %v791_v44, 4  ;;  %799 = vst.msk [vmem:[#allocation3 + $0x2c] sm:$0xf] %vm280_vm0, %v791_v44  ;;  %1265 = vmatpush3.bf16.msra.mxu1 %v1357_v45 }
 0x33b   : > { %1266 = vmatprep.subr.bf16.mxu1 %v1431_v5 }
 0x33c   : > { %v794_v49 = vsel %vm316_vm3, %v792_v46, %v793_v47 }
 0x33d   : > { %v795_v50 = vsel %vm1862_vm2, %v789_v36, %v794_v49  ;;  %v759_v51 = vpop.permute.xlu1 %758 }
 0x33e   : > { %798 = vst [vmem:[#allocation3 + $0x24] sm:$0xff] %v795_v50  ;;  %v761_v53 = vrot.slane %v759_v51, 4  ;;  %767 = vst.msk [vmem:[#allocation3 + $0x14] sm:$0xf] %vm280_vm0, %v759_v51  ;;  %v1214_v54 = vcombine.low %v779_v42, %v795_v50  ;;  %v1215_v56 = vcombine.high %v779_v42, %v795_v50  ;;  %vm1864_vm0 = vcmask 588800  }
 0x340   : > { %v762_v57 = vsel %vm316_vm3, %v760_v52, %v761_v53  ;;  %1001 = vmatprep.subr.bf16.mxu0 %v1215_v56  ;;  %vm1865_vm3 = vmmov %vm1864_vm0 }
 0x341   : > { %v763_v59 = vsel %vm1863_vm9, %v757_v48, %v762_v57  ;;  %v1358_v61 = vld [vmem:[#allocation3 + $0x20] ss:$12 sps:$4 sm:$0xff]   ;;  %1002 = vmatpush1.bf16.msra.mxu0 %v1214_v54 }
 0x342   : > { %766 = vst [vmem:[#allocation3 + $0xc] sm:$0xff] %v763_v59  ;;  %v1211_v62 = vcombine.low %v1681_v43, %v763_v59  ;;  %v1212_v1 = vcombine.high %v1681_v43, %v763_v59  ;;  %1267 = vmatpush3.bf16.msra.mxu1 %v1358_v61  ;;  %v903_v20 = vpop.permute.xlu0 %902 }
 0x343   : > { %1268 = vmatprep.subr.bf16.mxu1 %v1431_v5 }
 0x344   : > { %1003 = vmatprep.subr.bf16.mxu0 %v1212_v1 }
 0x345   : > { %v1359_v2 = vld [vmem:[#allocation3 + $0x8] ss:$12 sps:$4 sm:$0xff]   ;;  %1004 = vmatpush1.bf16.msra.mxu0 %v1211_v62 }
 0x346   : > { %1269 = vmatpush3.bf16.msra.mxu1 %v1359_v2 }
 0x348   : > { %1227 = vmatmul.mubr.msk.bf16.vlgmr.msra.gmra.mxu0 %vm1864_vm0, %v880_v3 }
 0x349   : > { %1271 = vmatmul.mubr.msk.bf16.vlgmr.msra.gmra.mxu1 %vm1865_vm3, %v880_v3 }
 0x34a   : > { %v473_v7 = vpop.permute.xlu1 %472 }
 0x34b   : > { %v1753_v8 = vadd.f32 %v604_v4, %v473_v7  ;;  %v1755_v43 = vadd.f32 %v606_v6, %v473_v7  ;;  %v1758_v5 = vadd.f32 %v1660_v60, %v473_v7 }
 0x34d   : > { %v659_v9 = vsel %vm1656_vm7, %v1753_v8, 0.0  ;;  %v660_v10 = vsel %vm1664_vm11, %v1755_v43, 0.0  ;;  %v661_v11 = vsel %vm1652_vm8, %v1758_v5, 0.0 }
 0x34e   : > { %v668_v12 = vadd.f32 %v660_v10, %v659_v9  ;;  %v669_v13 = vsel %vm663_vm10, %v661_v11, 0.0  ;;  %v676_v14 = vmul.f32 %v659_v9, %v659_v9  ;;  %v677_v15 = vmul.f32 %v660_v10, %v660_v10 }
 0x34f   : > { %v678_v16 = vmul.f32 %v661_v11, %v661_v11 }
 0x350   : > { %v670_v60 = vadd.f32 %v669_v13, %v668_v12  ;;  %v684_v17 = vadd.f32 %v677_v15, %v676_v14 }
 0x351   : > { %v685_v18 = vsel %vm663_vm10, %v678_v16, 0.0 }
 0x352   : > { %671 = vadd.xlane.f32.xlu1 %v670_v60  ;;  %v686_v19 = vadd.f32 %v685_v18, %v684_v17 }
 0x3db   : > { %v672_v46 = vpop.xlane.xlu1 %671 }
 0x3dc   : > { %v690_v48 = vmul.f32 0.00390625, %v672_v46 }
 0x3de   : > { %v694_v54 = vmul.f32 %v690_v48, %v690_v48  ;;  %v702_v10 = vsub.f32 %v1753_v8, %v690_v48  ;;  %v703_v11 = vsub.f32 %v1755_v43, %v690_v48  ;;  %v704_v12 = vsub.f32 %v1758_v5, %v690_v48 }
 0x408   : > { %v1023_v21 = vpop.f32.mrf.mxu0 }
 0x409   : > { %v1024_v22 = vadd.f32 %v1023_v21, %v903_v20  ;;  %v1064_v23 = vpop.f32.mrf.mxu1 }
 0x40a   : > { %v1025_v24 = vpop.f32.mrf.mxu0  ;;  %v1065_v25 = vadd.f32 %v1064_v23, %v903_v20 }
 0x40b   : > { %v1070_v26 = vsel %vm1656_vm7, %v1024_v22, 0.0  ;;  %v1026_v27 = vadd.f32 %v1025_v24, %v903_v20  ;;  %v1272_v28 = vpop.f32.mrf.mxu1 }
 0x40c   : > { %v1027_v29 = vpop.f32.mrf.mxu0  ;;  %v1072_v30 = vsel %vm1652_vm8, %v1065_v25, 0.0  ;;  %v1078_v31 = vmul.f32 %v1070_v26, %v1070_v26 }
 0x40d   : > { %v1071_v32 = vsel %vm1664_vm11, %v1026_v27, 0.0  ;;  %v1080_v33 = vmul.f32 %v1072_v30, %v1072_v30  ;;  %v1067_v34 = vpop.f32.mrf.mxu1  ;;  %v1074_v37 = vsel %vm663_vm10, %v1072_v30, 0.0 }
 0x40e   : > { %v1079_v35 = vmul.f32 %v1071_v32, %v1071_v32  ;;  %v1028_v36 = vpop.f32.mrf.mxu0  ;;  %v1073_v0 = vadd.f32 %v1071_v32, %v1070_v26 }
 0x40f   : > { %v1273_v38 = vpop.f32.mrf.mxu1  ;;  %v1082_v41 = vsel %vm663_vm10, %v1080_v33, 0.0 }
 0x410   : > { %v1075_v39 = vadd.f32 %v1074_v37, %v1073_v0  ;;  %v1081_v40 = vadd.f32 %v1079_v35, %v1078_v31 }
 0x412   : > { %1076 = vadd.xlane.f32.xlu0 %v1075_v39  ;;  %v1083_v42 = vadd.f32 %v1082_v41, %v1081_v40 }
 0x416   : > { %1084 = vadd.xlane.f32.xlu0 %v1083_v42 }
 0x41a   : > { %687 = vadd.xlane.f32.xlu0 %v686_v19 }
 0x49b   : > { %v1077_v44 = vpop.xlane.xlu0 %1076 }
 0x49c   : > { %v1086_v45 = vmul.f32 0.00390625, %v1077_v44 }
 0x49e   : > { %v1088_v49 = vmul.f32 %v1086_v45, %v1086_v45  ;;  %v1091_v1 = vsub.f32 %v1024_v22, %v1086_v45  ;;  %v1092_v2 = vsub.f32 %v1026_v27, %v1086_v45  ;;  %v1093_v3 = vsub.f32 %v1065_v25, %v1086_v45 }
 0x49f   : > { %v1085_v47 = vpop.xlane.xlu0 %1084 }
 0x4a0   : > { %v1087_v50 = vmul.f32 0.00390625, %v1085_v47 }
 0x4a2   : > { %v1089_v51 = vsub.f32 %v1087_v50, %v1088_v49 }
 0x4a3   : > { %v688_v52 = vpop.xlane.xlu0 %687 }
 0x4a4   : > { %v1090_v53 = vmax.f32 %v1089_v51, 0.0  ;;  %v692_v56 = vmul.f32 0.00390625, %v688_v52 }
 0x4a6   : > { %v1094_v57 = vadd.f32 1e-05, %v1090_v53  ;;  %v696_v59 = vsub.f32 %v692_v56, %v694_v54 }
 0x4a8   : > { %1362 = vrsqrt.f32 %v1094_v57  ;;  %v698_v61 = vmax.f32 %v696_v59, 0.0 }
 0x4aa   : > { %v706_v62 = vadd.f32 1e-05, %v698_v61 }
 0x4ac   : > { %1364 = vrsqrt.f32 %v706_v62 }
 0x4b5   : > { %v1363_v4 = vpop.eup %1362 }
 0x4b6   : > { %v1096_v6 = vmul.f32 %v1363_v4, %v1091_v1  ;;  %v1097_v7 = vmul.f32 %v1363_v4, %v1092_v2  ;;  %v1098_v9 = vmul.f32 %v1363_v4, %v1093_v3 }
 0x4b8   : > { %v1099_v14 = vmax.f32 %v1096_v6, 0.0  ;;  %v1100_v15 = vmax.f32 %v1097_v7, 0.0  ;;  %v1101_v18 = vmax.f32 %v1098_v9, 0.0 }
 0x4b9   : > { %v1365_v13 = vpop.eup %1364 }
 0x4ba   : > { %v712_v16 = vmul.f32 %v1365_v13, %v702_v10  ;;  %v713_v60 = vmul.f32 %v1365_v13, %v703_v11  ;;  %v714_v17 = vmul.f32 %v1365_v13, %v704_v12 }
 0x4bc   : > { %v1102_v19 = vadd.f32 %v1099_v14, %v712_v16  ;;  %v1103_v20 = vadd.f32 %v1100_v15, %v713_v60  ;;  %v1104_v21 = vadd.f32 %v1101_v18, %v714_v17 }
 0x4be   : > { %v1105_v8 = vsel %vm1656_vm7, %v1102_v19, 0.0  ;;  %v1106_v43 = vsel %vm1664_vm11, %v1103_v20, 0.0  ;;  %v1107_v5 = vsel %vm1652_vm8, %v1104_v21, 0.0 }
 0x4bf   : > { %1108 = vst [vmem:[%s217_s16] sm:$0xff] %v1105_v8  ;;  %1109 = vst [vmem:[%s217_s16 + $0x8] sm:$0xff] %v1106_v43 }
 0x4c0   : > { %1110 = vst.msk [vmem:[%s217_s16 + $0x10] sm:$0xff] %vm663_vm10, %v1107_v5 }
 0x4c1   : > { %1379 = shalt.err (!%p1376_p3)
}
 0x4c2   : > { %s1380_s9 = scalar_lea.hbm %s1789_s26, 384  ;;  %s1384_s12 = scalar_lea.hbm %s1844_s5, 768 }
 0x4c3   : > { %p1381_p4 = scmp.ne.s32.totalorder %s1789_s26, %s1380_s9  ;;  %p1385_p9 = scmp.lt.s32.totalorder %s1789_s26, %s1844_s5 }
 0x4c4   : > { %p1386_p10 = scmp.lt.s32.totalorder %s1384_s12, %s1380_s9 }
 0x4c5   : > { %p1382_p7 = pnand %p1381_p4, %p1509_p5 }
 0x4c6   : > { %p1387_p11 = por %p1386_p10, %p1385_p9 }
 0x4c7   : > { %p1383_p8 = pneg %p1382_p7 }
 0x4c9   : > { %p1388_p12 = pnand %p1387_p11, %p1383_p8 }
 0x4cb   : > { %1391 = shalt.err (!%p1388_p12)
}
 0x4cc   : > { %1283 = dma.vmem_to_hbm [thread:$0]  (%p1509_p5), %s1791_s17, 384, %s1789_s26, %s1112_s22  }
 0x4cd PF: > { %p1289_p13 = scmp.ge.s32.totalorder %s1426_s21, 2  ;;  %s1138_s15 = sand.u32 1, %s1414_s18  }
 0x4ce   : > { %s1139_s16 = scalar_lea.sflag [#allocation5], %s1138_s15 }
 0x4cf   : > { %p1286_p0 = pnand %p1289_p13, %p1513_p6 }
 0x4d1   : > { %p1287_p1 = pneg %p1286_p0 }
 0x4d3   : > { %1409 = dma.done.wait (%p1287_p1), %s1139_s16, 384  }
 0x4d4   : > { %1411 = vsyncadd (%p1287_p1), %s1139_s16, 4294966912  ;;  %p15_p2 = scmp.ge.s32.totalorder %s1496_s24, 4   ;;  %s1866_s18 = smov %s1418_s19 }
 0x4d5   : > { %s1867_s19 = smov %s1422_s20  ;;  %s1868_s20 = smov %s1507_s27 }
 0x4d6   : > { %s1869_s21 = smov %s1496_s24  ;;  %17 = sbr.rel (!%p15_p2) target bundleno = 3 (0x3), region = 75 }
 0x4db   :  { %1144 = vsyncpa [#allocation5], 1 }
 0x4dc   :  { %1146 = vsyncpa [#allocation5 + $0x1], 1 }

</bundles_post_ra>
